<compile_context>
chip_gen: v5e
topology: v5e:2x2
jax: 0.10.0
libtpu: 0.0.40
codegen_flags: <defaults>
</compile_context>

<pallas_src>
import math

import jax
import jax.numpy as jnp
from jax.experimental import pallas as pl
from jax.experimental.pallas import tpu as pltpu


def _rgcn_score_kernel(h_ref, base_ref, adj_ref, invdeg_ref, score_ref):
    """One (dst-tile i, src-tile k) grid step of the RGCN scorer.

    h_ref     : (R, Tsrc)       bf16  per-relation projections (x @ W_r).T, src on lanes
    base_ref  : (1, Tdst)       f32   root term + bias, dst on lanes
    adj_ref   : (R, Tsrc, Tdst) bf16  per-relation edge counts
    invdeg_ref: (R, Tdst)       f32   1/deg per (relation, dst)
    score_ref : (1, Tdst)       f32   lane-dense output row; doubles as the accumulator
                                      (its index_map ignores k, so it stays resident
                                      across the src/reduction axis).
    """
    ks = pl.program_id(1)

    @pl.when(ks == 0)
    def _init():
        # Root/self term + bias, once per dst tile.
        score_ref[...] = base_ref[...]

    acc = score_ref[...]
    num_rel = adj_ref.shape[0]
    for r in range(num_rel):                                   # static unroll, R small
        # (1, Tsrc) @ (Tsrc, Tdst) -> (1, Tdst): lane-dense output, K = Tsrc.
        part = jnp.dot(h_ref[r:r + 1, :], adj_ref[r],
                       preferred_element_type=jnp.float32)
        # FastRGCNConv 'mean': scale by 1/deg_r(dst) after the matmul (f32 VPU op).
        acc = acc + invdeg_ref[r:r + 1, :] * part
    score_ref[...] = acc

    @pl.when(ks == pl.num_programs(1) - 1)
    def _finalize():
        score_ref[...] = jnp.tanh(score_ref[...])


def _round_up(v, m):
    return ((v + m - 1) // m) * m


def rgcn_sag_pooling(x, edge_index, edge_attr, w_rel, w_root, bias,
                     ratio=0.5, tile_dst=1024, tile_src=512):
    """JAX/Pallas equivalent of RGCNSAGPooling.forward.

    x         : (N, C) node features
    edge_index: (2, E) int32 [src; dst]
    edge_attr : (E,)   int32 relation ids in [0, R)
    w_rel     : (C, R) relation weights (out_channels == 1, stored as columns)
    w_root    : (C, 1) root weight
    bias      : (1, 1) scalar bias
    tile_dst  : dst (lane/output) tile, multiple of 128.  Capped by the padded N.
    tile_src  : src (reduction)    tile, multiple of 128.  Capped by the padded N.
                Defaults (1024, 512) keep the double-buffered bf16 adjacency tile at
                2 * R*Tsrc*Tdst*2B = 8 MiB (R=4), safe on v5e/v6e/v7x.
    """
    n_nodes, n_feat = x.shape
    num_rel = w_rel.shape[1]
    assert tile_dst % 128 == 0 and tile_src % 128 == 0

    src = edge_index[0]
    dst = edge_index[1]

    # --- Padding / tiling.  Pad each axis only to its own tile; cap tiles at
    # round_up(N, 128) so small graphs do not pay quadratic padding waste.
    n_lane = _round_up(n_nodes, 128)
    t_dst = min(tile_dst, n_lane)
    t_src = min(tile_src, n_lane)
    # v7x megacore: make sure the parallel (dst) grid axis has >= 2 tiles when possible.
    if n_lane >= 256 and _round_up(n_nodes, t_dst) == t_dst:
        t_dst = 128 * max(1, (n_lane // 128) // 2)
    n_dst = _round_up(n_nodes, t_dst)
    n_src = _round_up(n_nodes, t_src)

    # --- Host-side prep (no f32 dense round-trip).
    # Per-relation edge counts scattered directly in bf16 at the final padded shape
    # (exact small integers for multiplicity <= 256), layout (relation, src, dst) so
    # the kernel contraction produces lane-dense (1, Tdst) rows.
    # TODO(synk): replace with edge-list/CSR + scalar prefetch for large sparse graphs.
    adj = jnp.zeros((num_rel, n_src, n_dst), jnp.bfloat16)
    adj = adj.at[edge_attr, src, dst].add(jnp.ones(src.shape, jnp.bfloat16))

    # In-degree per (relation, dst), scattered directly (no reduction over the dense adj).
    deg = jnp.zeros((num_rel, n_dst), jnp.float32).at[edge_attr, dst].add(1.0)
    invdeg = 1.0 / jnp.maximum(deg, 1.0)                 # f32, applied post-matmul in kernel

    # Hoisted projections (tiny XLA matmuls): hT (R, n_src) bf16, base (1, n_dst) f32.
    b_scalar = jnp.asarray(bias, jnp.float32).reshape(())
    x_bf = x.astype(jnp.bfloat16)
    h_nodes = jnp.dot(x_bf, w_rel.astype(jnp.bfloat16),
                      preferred_element_type=jnp.float32)          # (N, R)
    hT = jnp.zeros((num_rel, n_src), jnp.bfloat16)
    hT = hT.at[:, :n_nodes].set(h_nodes.T.astype(jnp.bfloat16))
    root = jnp.dot(x_bf, w_root.astype(jnp.bfloat16),
                   preferred_element_type=jnp.float32)             # (N, 1)
    base = jnp.zeros((1, n_dst), jnp.float32)
    base = base.at[0, :n_nodes].set(root[:, 0] + b_scalar)

    grid = (n_dst // t_dst, n_src // t_src)              # (dst tiles: parallel, src tiles: reduction)

    score_row = pl.pallas_call(
        _rgcn_score_kernel,
        out_shape=jax.ShapeDtypeStruct((1, n_dst), jnp.float32),
        grid_spec=pltpu.PrefetchScalarGridSpec(
            num_scalar_prefetch=0,
            grid=grid,
            in_specs=[
                pl.BlockSpec((num_rel, t_src), lambda i, k: (0, k)),           # hT src tile
                pl.BlockSpec((1, t_dst), lambda i, k: (0, i)),                 # root + bias
                pl.BlockSpec((num_rel, t_src, t_dst), lambda i, k: (0, k, i)),  # edge counts
                pl.BlockSpec((num_rel, t_dst), lambda i, k: (0, i)),           # 1/deg per (r, dst)
            ],
            out_specs=pl.BlockSpec((1, t_dst), lambda i, k: (0, i)),
        ),
        compiler_params=pltpu.CompilerParams(
            dimension_semantics=("parallel", "arbitrary"),
            # Working set is ~2x the adj tile (8 MiB at default tiles); 48 MiB stays
            # under v7x's 64 MiB physical VMEM while giving headroom on v5e/v6e.
            vmem_limit_bytes=48 * 1024 * 1024,
        ),
    )(hT, base, adj, invdeg)

    score = score_row[0, :n_nodes]                      # .view(-1)

    # topk(score, ratio, batch) with batch == zeros  =>  top ceil(ratio * N).
    # NOTE: jax.lax.top_k tie-breaking may differ from PyG's topk on duplicate scores.
    k_keep = int(math.ceil(ratio * n_nodes))
    top_scores, perm = jax.lax.top_k(score, k_keep)     # descending, like PyG topk

    # x = x[perm] * score[perm].view(-1, 1); multiplier == 1 => no extra scaling.
    # Tiny gather + broadcast multiply: left to XLA (a dedicated Pallas call here
    # would be pure launch/DMA overhead at (k, C) sizes).
    x_out = x[perm].astype(jnp.float32) * top_scores[:, None]

    # filter_adj: relabel kept nodes, drop edges touching removed nodes.
    # Static-shape variant: dropped edges are marked with -1 instead of compacted.
    # TODO(synk): dynamic compaction of filtered edges requires dynamic output shapes.
    node_map = jnp.full((n_nodes,), -1, jnp.int32).at[perm].set(
        jnp.arange(k_keep, dtype=jnp.int32))
    new_row = node_map[src]
    new_col = node_map[dst]
    edge_mask = (new_row >= 0) & (new_col >= 0)
    new_edge_index = jnp.where(edge_mask, jnp.stack([new_row, new_col]), -1)
    new_edge_attr = jnp.where(edge_mask, edge_attr, -1)

    batch = jnp.zeros((n_nodes,), jnp.int32)
    new_batch = batch[perm]

    return x_out, new_edge_index, new_edge_attr, new_batch, perm, top_scores


def _reference_scores(x, edge_index, edge_attr, w_rel, w_root, bias, num_rel):
    """Plain-JAX f32 reference of the RGCN scorer (FastRGCNConv mean aggregation)."""
    n = x.shape[0]
    src, dst = edge_index[0], edge_index[1]
    counts = jnp.zeros((num_rel, n, n), jnp.float32).at[edge_attr, dst, src].add(1.0)
    deg = jnp.maximum(jnp.sum(counts, axis=2, keepdims=True), 1.0)
    adj = counts / deg
    h = x @ w_rel                       # (N, R)
    out = x @ w_root                    # (N, 1)
    for r in range(num_rel):
        out = out + adj[r] @ h[:, r:r + 1]
    return jnp.tanh(out[:, 0] + bias.reshape(()))


def _glorot(key, shape):
    fan_in, fan_out = shape[0], shape[1]
    limit = math.sqrt(6.0 / (fan_in + fan_out))
    return jax.random.uniform(key, shape, jnp.float32, -limit, limit)


if __name__ == "__main__":
    # Small synthetic problem consistent with the module:
    #   in_channels = 32, num_relations = 4, ratio = 0.5
    N, C, R, E = 200, 32, 4, 800
    key = jax.random.PRNGKey(0)
    k_x, k_src, k_dst, k_et, k_wrel, k_wroot = jax.random.split(key, 6)

    x = jax.random.normal(k_x, (N, C), jnp.float32)
    src = jax.random.randint(k_src, (E,), 0, N, jnp.int32)
    dst = jax.random.randint(k_dst, (E,), 0, N, jnp.int32)
    edge_index = jnp.stack([src, dst])                       # (2, E)
    edge_attr = jax.random.randint(k_et, (E,), 0, R, jnp.int32)

    # Deterministic parameters (glorot weights, zero bias — like reset_parameters).
    w_rel = _glorot(k_wrel, (C, R))
    w_root = _glorot(k_wroot, (C, 1))
    bias = jnp.zeros((1, 1), jnp.float32)

    # tile_dst=256/tile_src=128 at N=200 (padded to 256) exercises a real 2x2 grid
    # (dst-parallel x src-reduction) including the output-resident accumulator path
    # and the ">= 2 dst tiles for megacore" adjustment.
    out = rgcn_sag_pooling(x, edge_index, edge_attr, w_rel, w_root, bias,
                           ratio=0.5, tile_dst=256, tile_src=128)
    out = jax.block_until_ready(out)
    x_pooled, ei_new, ea_new, batch_new, perm, score_perm = out

    k_keep = math.ceil(0.5 * N)
    assert x_pooled.shape == (k_keep, C)
    assert perm.shape == (k_keep,)
    assert score_perm.shape == (k_keep,)
    assert ei_new.shape == (2, E)
    assert batch_new.shape == (k_keep,)

    # Numerical sanity check of the Pallas scorer vs. a plain-JAX f32 reference
    # (bf16 inputs / f32 accumulation => loose tolerance).
    ref = _reference_scores(x, edge_index, edge_attr, w_rel, w_root, bias, R)
    err = float(jnp.max(jnp.abs(score_perm - ref[perm])))
    assert err < 5e-2, f"score mismatch vs reference: {err}"

    print("KERNEL_OK")
</pallas_src>

<mosaic_0001>
module attributes {stable_mosaic.version = 11 : i64} {
  func.func @_rgcn_score_kernel(%arg0: i32, %arg1: i32, %arg2: memref<4x128xbf16, #tpu.memory_space<vmem>>, %arg3: memref<1x128xf32, #tpu.memory_space<vmem>>, %arg4: memref<4x128x128xbf16, #tpu.memory_space<vmem>>, %arg5: memref<4x128xf32, #tpu.memory_space<vmem>>, %arg6: memref<1x128xf32, #tpu.memory_space<vmem>>) attributes {dimension_semantics = [#tpu.dimension_semantics<parallel>, #tpu.dimension_semantics<arbitrary>], iteration_bounds = array<i64: 2, 2>, scalar_prefetch = 0 : i64, scratch_operands = 0 : i64, tpu.core_type = #tpu.core_type<tc>, window_params = [{transform_indices = @transform_0, window_bounds = array<i64: 4, 128>}, {transform_indices = @transform_1, window_bounds = array<i64: 1, 128>}, {transform_indices = @transform_2, window_bounds = array<i64: 4, 128, 128>}, {transform_indices = @transform_3, window_bounds = array<i64: 4, 128>}, {transform_indices = @transform_4, window_bounds = array<i64: 1, 128>}]} {
    %c0_i32 = arith.constant 0 : i32
    %0 = arith.cmpi eq, %arg1, %c0_i32 : i32
    %1 = arith.extui %0 : i1 to i32
    %c0_i32_0 = arith.constant 0 : i32
    %2 = arith.cmpi ne, %1, %c0_i32_0 : i32
    scf.if %2 {
      %c0_33 = arith.constant 0 : index
      %c0_34 = arith.constant 0 : index
      %36 = vector.load %arg3[%c0_33, %c0_34] : memref<1x128xf32, #tpu.memory_space<vmem>>, vector<1x128xf32>
      %c0_35 = arith.constant 0 : index
      %c0_36 = arith.constant 0 : index
      %37 = vector.load %arg6[%c0_35, %c0_36] : memref<1x128xf32, #tpu.memory_space<vmem>>, vector<1x128xf32>
      tpu.vector_store %arg6[%c0_35, %c0_36], %36 {strides = array<i32>} : memref<1x128xf32, #tpu.memory_space<vmem>>, vector<1x128xf32>,
    } else {
    }
    %c0 = arith.constant 0 : index
    %c0_1 = arith.constant 0 : index
    %3 = vector.load %arg6[%c0, %c0_1] : memref<1x128xf32, #tpu.memory_space<vmem>>, vector<1x128xf32>
    %c0_2 = arith.constant 0 : index
    %c0_3 = arith.constant 0 : index
    %4 = vector.load %arg2[%c0_2, %c0_3] : memref<4x128xbf16, #tpu.memory_space<vmem>>, vector<1x128xbf16>
    %c0_4 = arith.constant 0 : index
    %c0_5 = arith.constant 0 : index
    %c0_6 = arith.constant 0 : index
    %5 = vector.load %arg4[%c0_4, %c0_5, %c0_6] : memref<4x128x128xbf16, #tpu.memory_space<vmem>>, vector<1x128x128xbf16>
    %6 = vector.shape_cast %5 : vector<1x128x128xbf16> to vector<128x128xbf16>
    %cst = arith.constant dense<0.000000e+00> : vector<1x128xf32>
    %7 = tpu.matmul %4, %6, %cst {dimension_numbers = #tpu.dot_dimension_numbers<[1], [0], [0], [1], [0, 0, 1, 1], [], []>} : vector<1x128xbf16>, vector<128x128xbf16>, vector<1x128xf32> -> vector<1x128xf32>
    %c0_7 = arith.constant 0 : index
    %c0_8 = arith.constant 0 : index
    %8 = vector.load %arg5[%c0_7, %c0_8] : memref<4x128xf32, #tpu.memory_space<vmem>>, vector<1x128xf32>
    %9 = arith.mulf %8, %7 : vector<1x128xf32>
    %10 = arith.addf %3, %9 : vector<1x128xf32>
    %c1 = arith.constant 1 : index
    %c0_9 = arith.constant 0 : index
    %11 = vector.load %arg2[%c1, %c0_9] : memref<4x128xbf16, #tpu.memory_space<vmem>>, vector<1x128xbf16>
    %c1_10 = arith.constant 1 : index
    %c0_11 = arith.constant 0 : index
    %c0_12 = arith.constant 0 : index
    %12 = vector.load %arg4[%c1_10, %c0_11, %c0_12] : memref<4x128x128xbf16, #tpu.memory_space<vmem>>, vector<1x128x128xbf16>
    %13 = vector.shape_cast %12 : vector<1x128x128xbf16> to vector<128x128xbf16>
    %cst_13 = arith.constant dense<0.000000e+00> : vector<1x128xf32>
    %14 = tpu.matmul %11, %13, %cst_13 {dimension_numbers = #tpu.dot_dimension_numbers<[1], [0], [0], [1], [0, 0, 1, 1], [], []>} : vector<1x128xbf16>, vector<128x128xbf16>, vector<1x128xf32> -> vector<1x128xf32>
    %c1_14 = arith.constant 1 : index
    %c0_15 = arith.constant 0 : index
    %15 = vector.load %arg5[%c1_14, %c0_15] : memref<4x128xf32, #tpu.memory_space<vmem>>, vector<1x128xf32>
    %16 = arith.mulf %15, %14 : vector<1x128xf32>
    %17 = arith.addf %10, %16 : vector<1x128xf32>
    %c2 = arith.constant 2 : index
    %c0_16 = arith.constant 0 : index
    %18 = vector.load %arg2[%c2, %c0_16] : memref<4x128xbf16, #tpu.memory_space<vmem>>, vector<1x128xbf16>
    %c2_17 = arith.constant 2 : index
    %c0_18 = arith.constant 0 : index
    %c0_19 = arith.constant 0 : index
    %19 = vector.load %arg4[%c2_17, %c0_18, %c0_19] : memref<4x128x128xbf16, #tpu.memory_space<vmem>>, vector<1x128x128xbf16>
    %20 = vector.shape_cast %19 : vector<1x128x128xbf16> to vector<128x128xbf16>
    %cst_20 = arith.constant dense<0.000000e+00> : vector<1x128xf32>
    %21 = tpu.matmul %18, %20, %cst_20 {dimension_numbers = #tpu.dot_dimension_numbers<[1], [0], [0], [1], [0, 0, 1, 1], [], []>} : vector<1x128xbf16>, vector<128x128xbf16>, vector<1x128xf32> -> vector<1x128xf32>
    %c2_21 = arith.constant 2 : index
    %c0_22 = arith.constant 0 : index
    %22 = vector.load %arg5[%c2_21, %c0_22] : memref<4x128xf32, #tpu.memory_space<vmem>>, vector<1x128xf32>
    %23 = arith.mulf %22, %21 : vector<1x128xf32>
    %24 = arith.addf %17, %23 : vector<1x128xf32>
    %c3 = arith.constant 3 : index
    %c0_23 = arith.constant 0 : index
    %25 = vector.load %arg2[%c3, %c0_23] : memref<4x128xbf16, #tpu.memory_space<vmem>>, vector<1x128xbf16>
    %c3_24 = arith.constant 3 : index
    %c0_25 = arith.constant 0 : index
    %c0_26 = arith.constant 0 : index
    %26 = vector.load %arg4[%c3_24, %c0_25, %c0_26] : memref<4x128x128xbf16, #tpu.memory_space<vmem>>, vector<1x128x128xbf16>
    %27 = vector.shape_cast %26 : vector<1x128x128xbf16> to vector<128x128xbf16>
    %cst_27 = arith.constant dense<0.000000e+00> : vector<1x128xf32>
    %28 = tpu.matmul %25, %27, %cst_27 {dimension_numbers = #tpu.dot_dimension_numbers<[1], [0], [0], [1], [0, 0, 1, 1], [], []>} : vector<1x128xbf16>, vector<128x128xbf16>, vector<1x128xf32> -> vector<1x128xf32>
    %c3_28 = arith.constant 3 : index
    %c0_29 = arith.constant 0 : index
    %29 = vector.load %arg5[%c3_28, %c0_29] : memref<4x128xf32, #tpu.memory_space<vmem>>, vector<1x128xf32>
    %30 = arith.mulf %29, %28 : vector<1x128xf32>
    %31 = arith.addf %24, %30 : vector<1x128xf32>
    %c0_30 = arith.constant 0 : index
    %c0_31 = arith.constant 0 : index
    %32 = vector.load %arg6[%c0_30, %c0_31] : memref<1x128xf32, #tpu.memory_space<vmem>>, vector<1x128xf32>
    tpu.vector_store %arg6[%c0_30, %c0_31], %31 {strides = array<i32>} : memref<1x128xf32, #tpu.memory_space<vmem>>, vector<1x128xf32>,
    %c1_i32 = arith.constant 1 : i32
    %33 = arith.cmpi eq, %arg1, %c1_i32 : i32
    %34 = arith.extui %33 : i1 to i32
    %c0_i32_32 = arith.constant 0 : i32
    %35 = arith.cmpi ne, %34, %c0_i32_32 : i32
    scf.if %35 {
      %c0_33 = arith.constant 0 : index
      %c0_34 = arith.constant 0 : index
      %36 = vector.load %arg6[%c0_33, %c0_34] : memref<1x128xf32, #tpu.memory_space<vmem>>, vector<1x128xf32>
      %37 = math.tanh %36 : vector<1x128xf32>
      %c0_35 = arith.constant 0 : index
      %c0_36 = arith.constant 0 : index
      %38 = vector.load %arg6[%c0_35, %c0_36] : memref<1x128xf32, #tpu.memory_space<vmem>>, vector<1x128xf32>
      tpu.vector_store %arg6[%c0_35, %c0_36], %37 {strides = array<i32>} : memref<1x128xf32, #tpu.memory_space<vmem>>, vector<1x128xf32>,
    } else {
    }
    return
  }
  func.func @transform_0(%arg0: i32, %arg1: i32) -> (i32, i32) {
    %c0_i32 = arith.constant 0 : i32
    %c0_i32_0 = arith.constant 0 : i32
    return %c0_i32, %arg1 : i32, i32
  }
  func.func @transform_1(%arg0: i32, %arg1: i32) -> (i32, i32) {
    %c0_i32 = arith.constant 0 : i32
    %c0_i32_0 = arith.constant 0 : i32
    return %c0_i32, %arg0 : i32, i32
  }
  func.func @transform_2(%arg0: i32, %arg1: i32) -> (i32, i32, i32) {
    %c0_i32 = arith.constant 0 : i32
    %c0_i32_0 = arith.constant 0 : i32
    return %c0_i32, %arg1, %arg0 : i32, i32, i32
  }
  func.func @transform_3(%arg0: i32, %arg1: i32) -> (i32, i32) {
    %c0_i32 = arith.constant 0 : i32
    %c0_i32_0 = arith.constant 0 : i32
    return %c0_i32, %arg0 : i32, i32
  }
  func.func @transform_4(%arg0: i32, %arg1: i32) -> (i32, i32) {
    %c0_i32 = arith.constant 0 : i32
    %c0_i32_0 = arith.constant 0 : i32
    return %c0_i32, %arg0 : i32, i32
  }
}

</mosaic_0001>

<bundles_post_ra>
// kernel: tpu_custom_call.1
= control target key start
LH: loop header
LB: loop body
LE: loop exit
PB: predicated region body
PF: predicated region fallthrough
CT: control target
= control target key end

     0   :  { %s1903_s0 = inlined_call_operand.hbm [shape: bf16[4,256], index: 0, kind: input, shape index: {}]   ;;  %s1904_s1 = inlined_call_operand.hbm [shape: f32[1,256], index: 1, kind: input, shape index: {}]   ;;  %s1905_s2 = inlined_call_operand.hbm [shape: bf16[4,256,256], index: 2, kind: input, shape index: {}]   ;;  %s1906_s3 = inlined_call_operand.hbm [shape: f32[4,256], index: 3, kind: input, shape index: {}]   ;;  %s1907_s4 = inlined_call_operand.hbm [shape: f32[1,256], index: 4, kind: output, shape index: {}]  }
   0x1   :  { %1925 = sst [smem:[#allocation34_spill]] %s1907_s4 }
   0x2   :  { %9 = vsyncpa [#allocation3], 0 }
   0x3   :  { %11 = vsyncpa [#allocation3 + $0x1], 0 }
   0x4   :  { %12 = vsyncpa [#allocation6], 0 }
   0x5   :  { %14 = vsyncpa [#allocation6 + $0x1], 0 }
   0x6   :  { %15 = vsyncpa [#allocation9], 0 }
   0x7   :  { %17 = vsyncpa [#allocation9 + $0x1], 0 }
   0x8   :  { %18 = vsyncpa [#allocation4], 0 }
   0x9   :  { %20 = vsyncpa [#allocation4 + $0x1], 0  ;;  %s1533_s15 = smov 0   ;;  %s1535_s16 = smov 0  }
   0xa   :  { %s1537_s17 = smov 0   ;;  %s1539_s18 = smov 0  }
   0xb   :  { %s1541_s19 = smov 0   ;;  %s1543_s20 = smov 0  }
   0xc   :  { %s1545_s21 = smov 0   ;;  %s1547_s22 = smov 0  }
   0xd   :  { %s1549_s23 = smov 0   ;;  %s1551_s24 = smov 0  }
   0xe   :  { %s1553_s25 = smov 0   ;;  %s1555_s26 = smov 0  }
   0xf   :  { %s1557_s27 = smov 0   ;;  %s1559_s28 = smov 0  }
  0x10 LB: > { %1926 = sst [smem:[#allocation19_spill]] %s1451_s16  ;;  %s1602_s29 = sadd.s32 4294967295, %s1499_s28   ;;  %s1499_s28 = sphi %s1559_s28, %s26_s28   ;;  %s1495_s27 = sphi %s1557_s27, %s1985_s27   ;;  %s1491_s26 = sphi %s1555_s26, %s1984_s26   ;;  %s1487_s25 = sphi %s1553_s25, %s1983_s25   ;;  %s1483_s24 = sphi %s1551_s24, %s1982_s24   ;;  %s1479_s23 = sphi %s1549_s23, %s1981_s23   ;;  %s1475_s22 = sphi %s1547_s22, %s1980_s22   ;;  %s1471_s21 = sphi %s1545_s21, %s1979_s21   ;;  %s1467_s20 = sphi %s1543_s20, %s1978_s20   ;;  %s1463_s19 = sphi %s1541_s19, %s1977_s19   ;;  %s1459_s18 = sphi %s1539_s18, %s1976_s18   ;;  %s1455_s17 = sphi %s1537_s17, %s1975_s17   ;;  %s1451_s16 = sphi %s1535_s16, %s1974_s16   ;;  %s1447_s15 = sphi %s1533_s15, %s1965_s15  }
  0x11   : > { %1927 = sst [smem:[#allocation20_spill]] %s1459_s18  ;;  %s35_s5 = sadd.s32 1, %s1491_s26 }
  0x12   : > { %1928 = sst [smem:[#allocation21_spill]] %s1463_s19  ;;  %s38_s6 = sadd.s32 1, %s1495_s27 }
  0x13   : > { %1929 = sst [smem:[#allocation22_spill]] %s1479_s23  ;;  %p36_p0 = scmp.ge.s32.totalorder %s35_s5, 2 }
  0x14   : > { %1930 = sst [smem:[#allocation23_spill]] %s1483_s24  ;;  %s45_s7 = sadd.s32 1, %s1479_s23 }
  0x15   : > { %1931 = sst [smem:[#allocation24_spill]] %s1487_s25  ;;  %p52_p1 = scmp.ne.s32.totalorder %s1479_s23, %s1475_s22 }
  0x16   : > { %p53_p2 = scmp.eq.s32.totalorder %s1499_s28, 0  ;;  %s1987_s5 = smov (%p36_p0, %s35_s5), 0 }
  0x17   : > { %1932 = sst [smem:[#allocation25_spill]] %s1987_s5  ;;  %s1989_s6 = smov (!%p36_p0, %s38_s6), %s1495_s27 }
  0x18   : > { %s42_s8 = ssub.s32 %s1491_s26, %s1987_s5  ;;  %p1618_p3 = por %p53_p2, %p52_p1 }
  0x19   : > { %p40_p4 = scmp.ge.s32.totalorder %s1989_s6, 2  ;;  %p43_p5 = scmp.eq.s32.totalorder %s42_s8, 0 }
  0x1a   : > { %p58_p6 = scmp.ne.s32.totalorder %s1475_s22, %s1471_s21  ;;  %p59_p7 = scmp.eq.s32.totalorder %s1602_s29, 0 }
  0x1b   : > { %s1991_s6 = smov (%p40_p4, %s1989_s6), 0  ;;  %s71_s13 = sadd.s32 1, %s1467_s20 }
  0x1c   : > { %1934 = sst [smem:[#allocation26_spill]] %s1991_s6  ;;  %p1631_p8 = por %p59_p7, %p58_p6 }
  0x1d   : > { %s1627_s10 = scalar_select %p43_p5, %s1479_s23, %s45_s7  }
  0x1e   : > { %s1936_s11 = scalar_select %p1631_p8, 1, 0 }
  0x1f   : > { %1935 = sst [smem:[#allocation27_spill]] %s1627_s10  ;;  %s68_s12 = ssub.s32 %s1495_s27, %s1991_s6 }
  0x20   : > { %p69_p9 = scmp.eq.s32.totalorder %s68_s12, 0  ;;  %p78_p10 = scmp.ne.s32.totalorder %s1467_s20, %s1463_s19 }
  0x21   : > { %p1910_p11 = scmp.ne.s32.totalorder %s1463_s19, %s1459_s18  ;;  %s96_s30 = sor.u32 %s68_s12, %s42_s8 }
  0x22   : > { %s1643_s14 = scalar_select %p69_p9, %s1467_s20, %s71_s13  }
  0x23   : > { %p1650_p12 = por %p78_p10, %p53_p2  ;;  %p1659_p13 = por %p1910_p11, %p59_p7 }
  0x24   : > { %1937 = sst [smem:[#allocation28_spill]] %s1643_s14  ;;  %s99_s6 = sadd.s32 1, %s1455_s17 }
  0x25   : > { %s1939_s7 = scalar_select %p1659_p13, 1, 0 }
  0x26   : > { %p97_p0 = scmp.eq.s32.totalorder %s96_s30, 0  ;;  %p106_p1 = scmp.ne.s32.totalorder %s1455_s17, %s1451_s16 }
  0x27   : > { %1940 = sst [smem:[#allocation29_spill]] %s1939_s7  ;;  %p112_p4 = scmp.ne.s32.totalorder %s1451_s16, %s1447_s15 }
  0x28   : > { %p162_p5 = scmp.eq.s32.totalorder %s1602_s29, 3  ;;  %p1674_p6 = por %p106_p1, %p53_p2 }
  0x29   : > { %s1670_s13 = scalar_select %p97_p0, %s1455_s17, %s99_s6  }
  0x2a   : > { %p1680_p9 = por %p112_p4, %p59_p7  ;;  %p1687_p11 = por %p162_p5, %p78_p10 }
  0x2b   : > { %1941 = sst [smem:[#allocation30_spill]] %s1670_s13  ;;  %s1947_s30 = sadd.s32 4294967294, %s1499_s28  }
  0x2c   : > { %s1943_s10 = scalar_select %p1680_p9, 1, 0 }
  0x2d   : > { %s1945_s8 = scalar_select %p1687_p11, 1, 0 }
  0x2e   : > { %1944 = sst [smem:[#allocation31_spill]] %s1943_s10  ;;  %p168_p13 = scmp.eq.s32.totalorder %s1947_s30, 3 }
  0x2f   : > { %1946 = sst [smem:[#allocation32_spill]] %s1945_s8  ;;  %p1948_p8 = scmp.ne.s32.totalorder %s1463_s19, %s1459_s18 }
  0x30   : > { %p886_p2 = scmp.ge.s32.totalorder %s1499_s28, 4 }
  0x31   : > { %p1696_p0 = por %p168_p13, %p1948_p8  ;;  %s188_s6 = sand.u32 (!%p886_p2), 1, %s1479_s23  }
  0x32   : > { %184 = sbr.rel (%p886_p2) target bundleno = 80 (0x50), region = 16  ;;  %s888_s12 = sshll.u32 (!%p886_p2), %s1491_s26, 1 }
  0x33   : > { %s1949_s15 = scalar_select %p1696_p0, 1, 0 }
  0x34   : > { %s887_s14 = sshll.u32 (!%p886_p2), %s188_s6, 1  ;;  %s196_s30 = scalar_lea.hbm (!%p886_p2), %s1903_s0, %s888_s12 }
  0x35   : > { %1950 = sst [smem:[#allocation33_spill]] %s1949_s15  ;;  %s198_s18 = sshll.u32 (!%p886_p2), %s196_s30, 4  ;;  %s199_s18 = int_to_ptr.hbm [resolvable:$true] %s198_s18 }
  0x36   : > { %s192_s4 = scalar_lea.vmem (!%p886_p2), [#allocation2], %s887_s14  ;;  %s189_s25 = scalar_lea.sflag (!%p886_p2), [#allocation3], %s188_s6 }
  0x37   : > { %s200_s15 = sshll.u32 %s192_s4, 4  ;;  %s207_s24 = sand.u32 1, %s1499_s28   ;;  %s201_s15 = int_to_ptr.vmem [resolvable:$true] %s200_s15 }
  0x38   : > { %1114 = dma.hbm_to_vmem [thread:$0]  (%p1618_p3), %s199_s18, 32, %s201_s15, %s189_s25  }
  0x39   : > { %s1710_s10 = sand.u32 1, %s1467_s20   ;;  %s213_s7 = scalar_lea.hbm %s1904_s1, %s1495_s27 }
  0x3a   : > { %s210_s19 = scalar_lea.vmem [#allocation5], %s1710_s10  ;;  %s215_s8 = sshll.u32 %s213_s7, 4  ;;  %s216_s8 = int_to_ptr.hbm [resolvable:$true] %s215_s8 }
  0x3b   : > { %s217_s13 = sshll.u32 %s210_s19, 4  ;;  %s1717_s14 = scalar_lea.sflag [#allocation6], %s207_s24  ;;  %s218_s13 = int_to_ptr.vmem [resolvable:$true] %s217_s13 }
  0x3c   : > { %1115 = dma.hbm_to_vmem [thread:$0]  (%p1650_p12), %s216_s8, 16, %s218_s13, %s1717_s14  }
  0x3d   : > { %s226_s4 = sand.u32 1, %s1455_s17   ;;  %s1081_s16 = sshll.u32 %s1491_s26, 5 }
  0x3e   : > { %s889_s18 = sshll.u32 %s226_s4, 8  ;;  %s233_s23 = sadd.s32 %s1495_s27, %s1081_s16 }
  0x3f   : > { %s892_s19 = sshll.u32 %s233_s23, 2  ;;  %s228_s7 = scalar_lea.vmem [#allocation7], %s889_s18 }
  0x40   : > { %s235_s24 = scalar_lea.hbm %s1905_s2, %s892_s19  ;;  %s250_s15 = sshll.u32 %s228_s7, 4  ;;  %s251_s15 = int_to_ptr.vmem [resolvable:$true] %s250_s15 }
  0x41   : > { %s1116_s6 = scalar_select %p1674_p6, [#allocation0], [#allocation13] }
  0x42   : > { %s248_s12 = sshll.u32 %s235_s24, 4  ;;  %s1501_s13 = smov 4096   ;;  %s249_s12 = int_to_ptr.hbm [resolvable:$true] %s248_s12 }
  0x43   : > { %s240_s30 = sld [smem:[%s1116_s6]]   ;;  %s1502_s8 = smov 1024  }
  0x44   : > { %1117 = sst [smem:[#allocation12]] (%p1674_p6), %s1501_s13  ;;  %s1503_s4 = smov 16  }
  0x45   : > { %1118 = sst [smem:[#allocation12 + $0x1]] (%p1674_p6), %s1502_s8  ;;  %s1504_s16 = smov 128  }
  0x46   : > { %1119 = sst [smem:[#allocation12 + $0x2]] (%p1674_p6), %s1503_s4  ;;  %s1505_s23 = smov 64  }
  0x47   : > { %1120 = sst [smem:[#allocation12 + $0x3]] (%p1674_p6), %s1504_s16  ;;  %s1506_s25 = smov 4  }
  0x48   : > { %1121 = sst [smem:[#allocation12 + $0x4]] (%p1674_p6), %s1505_s23  ;;  %s1507_s9 = smov [#allocation11]  }
  0x49   : > { %s893_s18 = sshll.u32 %s240_s30, 26  ;;  %1122 = sst [smem:[#allocation12 + $0x5]] (%p1674_p6), %s1506_s25 }
  0x4a   : > { %s894_s19 = sadd.s32 134217728, %s893_s18  ;;  %s895_s24 = sshll.u32 %s1710_s10, 2 }
  0x4b   : > { %1123 = dma.general (%p1674_p6), %s249_s12, 4096, %s251_s15, %s1717_s14, %s1507_s9, [#allocation12], %s894_s19, 0  }
  0x4c   : > { %s896_s7 = sshll.u32 %s1495_s27, 2  ;;  %s277_s8 = scalar_lea.vmem [#allocation8], %s895_s24 }
  0x4d   : > { %s281_s30 = scalar_lea.hbm %s1906_s3, %s896_s7  ;;  %s285_s4 = sshll.u32 %s277_s8, 4  ;;  %s286_s4 = int_to_ptr.vmem [resolvable:$true] %s285_s4 }
  0x4e   : > { %s283_s16 = sshll.u32 %s281_s30, 4  ;;  %s274_s18 = scalar_lea.sflag [#allocation9], %s1710_s10  ;;  %s284_s16 = int_to_ptr.hbm [resolvable:$true] %s283_s16 }
  0x4f   : > { %1124 = dma.hbm_to_vmem [thread:$0]  (%p1650_p12), %s284_s16, 64, %s286_s4, %s274_s18  }
  0x50 PF: > { %p897_p3 = scmp.ge.s32.totalorder %s1499_s28, 1  ;;  %p290_p7 = scmp.lt.s32.totalorder %s1499_s28, 5 }
  0x52   : > { %p291_p8 = pnand %p897_p3, %p290_p7 }
  0x53   : > { %s296_s5 = sand.u32 (!%p291_p8), 1, %s1475_s22   ;;  %p1951_p10 = scmp.ne.s32.totalorder (!%p291_p8), %s1936_s11, 0 }
  0x54   : > { %294 = sbr.rel (%p291_p8) target bundleno = 337 (0x151), region = 36  ;;  %s898_s14 = sshll.u32 (!%p291_p8), %s296_s5, 1 }
  0x55   : > { %s297_s15 = scalar_lea.sflag (!%p291_p8), [#allocation3], %s296_s5  ;;  %s1756_s12 = scalar_lea.vmem (!%p291_p8), [#allocation2], %s898_s14 }
  0x59   : > { %1426 = dma.done.wait (%p1951_p10), %s297_s15, 32  }
  0x5a   : > { %1428 = vsyncadd (%p1951_p10), %s297_s15, 4294967264  ;;  %s1952_s10 = sld [smem:[#allocation21_spill]]  ;;  %s306_s23 = sand.u32 1, %s1602_s29  }
  0x5b   : > { %s1953_s21 = sld [smem:[#allocation29_spill]]  ;;  %s307_s25 = scalar_lea.sflag [#allocation6], %s306_s23 }
  0x60   : > { %s1764_s19 = sand.u32 1, %s1952_s10  }
  0x61   : > { %s309_s9 = scalar_lea.vmem [#allocation5], %s1764_s19  ;;  %p1954_p12 = scmp.ne.s32.totalorder %s1953_s21, 0 }
  0x63   : > { %1430 = dma.done.wait (%p1954_p12), %s307_s25, 16  }
  0x64   : > { %1432 = vsyncadd (%p1954_p12), %s307_s25, 4294967280  ;;  %s1955_s24 = sld [smem:[#allocation19_spill]] }
  0x6a   : > { %s317_s6 = sand.u32 1, %s1955_s24  }
  0x6b   : > { %s899_s13 = sshll.u32 %s317_s6, 8 }
  0x6c   : > { %s1772_s11 = scalar_lea.vmem [#allocation7], %s899_s13 }
  0x6d   : > { %1434 = dma.done.wait (%p1680_p9), %s307_s25, 4096  }
  0x6e   : > { %1436 = vsyncadd (%p1680_p9), %s307_s25, 4294963200  ;;  %s900_s29 = sshll.u32 %s1764_s19, 2  ;;  %s326_s30 = scalar_lea.sflag [#allocation9], %s1764_s19 }
  0x6f   : > { %s1780_s8 = scalar_lea.vmem [#allocation8], %s900_s29 }
  0x70   : > { %1438 = dma.done.wait (%p1954_p12), %s326_s30, 64  }
  0x71   : > { %1440 = vsyncadd (%p1954_p12), %s326_s30, 4294967232  ;;  %s1787_s4 = scalar_lea.vmem [#allocation10], %s1764_s19  ;;  %s1957_s16 = sld [smem:[#allocation23_spill]] }
  0x77   : > { %p901_p13 = scmp.ne.s32.totalorder %s1957_s16, 0 }
  0x79   : > { %372 = sbr.rel (%p901_p13) target bundleno = 128 (0x80), region = 56 }
  0x7e   : > { %v373_v0 = vld [vmem:[%s309_s9] sm:$0x1] }
  0x7f   : > { %374 = vst [vmem:[%s1787_s4] sm:$0x1] %v373_v0 }
  0x80 PF: > { %v1089_v1 = vld [vmem:[%s1772_s11 + $0x38] sm:$0xff]  ;;  %v1088_v5 = vld [vmem:[%s1772_s11 + $0x30] sm:$0xff]  ;;  %v1087_v9 = vld [vmem:[%s1772_s11 + $0x28] sm:$0xff]  ;;  %s1958_s18 = sld [smem:[#allocation23_spill]] }
  0x81   : > { %v1097_v2 = vld [vmem:[%s1772_s11 + $0x78] sm:$0xff]  ;;  %441 = vmatpush.bf16.msra.mxu0 %v1089_v1  ;;  %v1096_v6 = vld [vmem:[%s1772_s11 + $0x70] sm:$0xff]  ;;  %v1095_v10 = vld [vmem:[%s1772_s11 + $0x68] sm:$0xff] }
  0x82   : > { %v1105_v3 = vld [vmem:[%s1772_s11 + $0xb8] sm:$0xff]  ;;  %528 = vmatpush.bf16.msra.mxu1 %v1097_v2  ;;  %v1104_v7 = vld [vmem:[%s1772_s11 + $0xb0] sm:$0xff]  ;;  %v1103_v11 = vld [vmem:[%s1772_s11 + $0xa8] sm:$0xff] }
  0x83   : > { %v1113_v4 = vld [vmem:[%s1772_s11 + $0xf8] sm:$0xff]  ;;  %616 = vmatpush.bf16.msra.mxu2 %v1105_v3  ;;  %v1112_v8 = vld [vmem:[%s1772_s11 + $0xf0] sm:$0xff]  ;;  %v1111_v12 = vld [vmem:[%s1772_s11 + $0xe8] sm:$0xff] }
  0x84   : > { %705 = vmatpush.bf16.msra.mxu3 %v1113_v4  ;;  %v1086_v13 = vld [vmem:[%s1772_s11 + $0x20] sm:$0xff]  ;;  %v376_v15 = vld [vmem:[%s1756_s12] sm:$0x1]  ;;  %v544_v22 = vld [vmem:[%s1756_s12] sm:$0x2] }
  0x85   : > { %442 = vmatpush.bf16.msra.mxu0 %v1088_v5  ;;  %v1094_v14 = vld [vmem:[%s1772_s11 + $0x60] sm:$0xff]  ;;  %475 = vst [vmem:[#allocation1] ss:$4 sm:$0xff] %v376_v15  ;;  %v1085_v18 = vld [vmem:[%s1772_s11 + $0x18] sm:$0xff]  ;;  %v1084_v23 = vld [vmem:[%s1772_s11 + $0x10] sm:$0xff] }
  0x86   : > { %529 = vmatpush.bf16.msra.mxu1 %v1096_v6  ;;  %v1102_v16 = vld [vmem:[%s1772_s11 + $0xa0] sm:$0xff]  ;;  %v1093_v19 = vld [vmem:[%s1772_s11 + $0x58] sm:$0xff]  ;;  %v1092_v24 = vld [vmem:[%s1772_s11 + $0x50] sm:$0xff]  ;;  %p1078_p1 = scmp.ne.s32.totalorder %s1958_s18, 1 }
  0x87   : > { %617 = vmatpush.bf16.msra.mxu2 %v1104_v7  ;;  %v1110_v17 = vld [vmem:[%s1772_s11 + $0xe0] sm:$0xff]  ;;  %v1101_v20 = vld [vmem:[%s1772_s11 + $0x98] sm:$0xff]  ;;  %v1100_v26 = vld [vmem:[%s1772_s11 + $0x90] sm:$0xff] }
  0x88   : > { %706 = vmatpush.bf16.msra.mxu3 %v1112_v8  ;;  %v1109_v21 = vld [vmem:[%s1772_s11 + $0xd8] sm:$0xff]  ;;  %v1108_v27 = vld [vmem:[%s1772_s11 + $0xd0] sm:$0xff]  ;;  %v1083_v28 = vld [vmem:[%s1772_s11 + $0x8] sm:$0xff] }
  0x89   : > { %443 = vmatpush.bf16.msra.mxu0 %v1087_v9  ;;  %v1091_v29 = vld [vmem:[%s1772_s11 + $0x48] sm:$0xff]  ;;  %v632_v32 = vld [vmem:[%s1756_s12] sm:$0x2]  ;;  %v1082_v33 = vld [vmem:[%s1772_s11] sm:$0xff] }
  0x8a   : > { %530 = vmatpush.bf16.msra.mxu1 %v1095_v10  ;;  %v1099_v30 = vld [vmem:[%s1772_s11 + $0x88] sm:$0xff]  ;;  %v1090_v34 = vld [vmem:[%s1772_s11 + $0x40] sm:$0xff]  ;;  %v375_v44 = vld [vmem:[%s1787_s4] sm:$0x1] }
  0x8b   : > { %618 = vmatpush.bf16.msra.mxu2 %v1103_v11  ;;  %v1107_v31 = vld [vmem:[%s1772_s11 + $0xc8] sm:$0xff]  ;;  %v1098_v36 = vld [vmem:[%s1772_s11 + $0x80] sm:$0xff] }
  0x8c   : > { %707 = vmatpush.bf16.msra.mxu3 %v1111_v12  ;;  %v476_v25 = vld.sshfl [vmem:[#allocation1] sm:$0xff pattern:$0x73625140]  ;;  %v1106_v37 = vld [vmem:[%s1772_s11 + $0xc0] sm:$0xff] }
  0x8d   : > { %444 = vmatpush.bf16.msra.mxu0 %v1086_v13  ;;  %563 = vst [vmem:[#allocation1] ss:$4 sm:$0xff] %v544_v22  ;;  %v477_v38 = vshrl.u32 %v476_v25, 16  ;;  %v454_v43 = vld [vmem:[%s1780_s8] sm:$0x1] }
  0x8e   : > { %531 = vmatpush.bf16.msra.mxu1 %v1094_v14  ;;  %v541_v47 = vld [vmem:[%s1780_s8 + $0x1] sm:$0x1]  ;;  %v629_v51 = vld [vmem:[%s1780_s8 + $0x2] sm:$0x1]  ;;  %v718_v57 = vld [vmem:[%s1780_s8 + $0x3] sm:$0x1] }
  0x8f   : > { %619 = vmatpush.bf16.msra.mxu2 %v1102_v16 }
  0x90   : > { %708 = vmatpush.bf16.msra.mxu3 %v1110_v17 }
  0x91   : > { %445 = vmatpush.bf16.msra.mxu0 %v1085_v18 }
  0x92   : > { %532 = vmatpush.bf16.msra.mxu1 %v1093_v19 }
  0x93   : > { %620 = vmatpush.bf16.msra.mxu2 %v1101_v20 }
  0x94   : > { %709 = vmatpush.bf16.msra.mxu3 %v1109_v21  ;;  %v564_v35 = vld.sshfl [vmem:[#allocation1] sm:$0xff pattern:$0x73625140] }
  0x95   : > { %446 = vmatpush.bf16.msra.mxu0 %v1084_v23  ;;  %651 = vst [vmem:[#allocation1] ss:$4 sm:$0xff] %v632_v32  ;;  %v566_v39 = vrot.slane %v564_v35, 1 }
  0x96   : > { %533 = vmatpush.bf16.msra.mxu1 %v1092_v24 }
  0x97   : > { %621 = vmatpush.bf16.msra.mxu2 %v1100_v26 }
  0x98   : > { %710 = vmatpush.bf16.msra.mxu3 %v1108_v27 }
  0x99   : > { %447 = vmatpush.bf16.msra.mxu0 %v1083_v28 }
  0x9a   : > { %534 = vmatpush.bf16.msra.mxu1 %v1091_v29 }
  0x9b   : > { %622 = vmatpush.bf16.msra.mxu2 %v1099_v30 }
  0x9c   : > { %711 = vmatpush.bf16.msra.mxu3 %v1107_v31  ;;  %v652_v40 = vld.sshfl [vmem:[#allocation1] sm:$0xff pattern:$0x73625140] }
  0x9d   : > { %448 = vmatpush.bf16.msra.mxu0 %v1082_v33  ;;  %v653_v41 = vshrl.u32 %v652_v40, 16 }
  0x9e   : > { %535 = vmatpush.bf16.msra.mxu1 %v1090_v34 }
  0x9f   : > { %623 = vmatpush.bf16.msra.mxu2 %v1098_v36  ;;  %v655_v42 = vrot.slane %v653_v41, 1 }
  0xa0   : > { %712 = vmatpush.bf16.msra.mxu3 %v1106_v37  ;;  %449 = vmatmul.bf16.vlgmr.msra.gmra.mxu0 %v376_v15 }
  0xa1   : > { %536 = vmatmul.bf16.vlgmr.msra.gmra.mxu1 %v477_v38 }
  0xa2   : > { %624 = vmatmul.bf16.vlgmr.msra.gmra.mxu2 %v566_v39 }
  0xa3   : > { %713 = vmatmul.bf16.vlgmr.msra.gmra.mxu3 %v655_v42 }
 0x11d   : > { %v450_v45 = vpop.f32.mrf.mxu0 }
 0x11e   : > { %v537_v46 = vpop.f32.mrf.mxu1  ;;  %v455_v48 = vmul.f32 %v454_v43, %v450_v45 }
 0x11f   : > { %v542_v50 = vmul.f32 %v541_v47, %v537_v46 }
 0x120   : > { %v456_v49 = vadd.f32 %v455_v48, %v375_v44 }
 0x122   : > { %v543_v52 = vadd.f32 %v542_v50, %v456_v49 }
 0x125   : > { %v625_v53 = vpop.f32.mrf.mxu2  ;;  %v452_v55 = vpop.f32.mrf.mxu0 }
 0x126   : > { %v630_v54 = vmul.f32 %v629_v51, %v625_v53  ;;  %v539_v56 = vpop.f32.mrf.mxu1  ;;  %v714_v59 = vpop.f32.mrf.mxu3 }
 0x127   : > { %v719_v60 = vmul.f32 %v718_v57, %v714_v59 }
 0x128   : > { %v631_v58 = vadd.f32 %v630_v54, %v543_v52 }
 0x12a   : > { %v720_v61 = vadd.f32 %v719_v60, %v631_v58  ;;  %725 = sbr.rel (%p1078_p1) target bundleno = 316 (0x13c), region = 60 }
 0x12c   : > { %721 = vst [vmem:[%s1787_s4] sm:$0x1] %v720_v61 }
 0x12d   : > { %v627_v62 = vpop.f32.mrf.mxu2 }
 0x12e   : > { %v716_v63 = vpop.f32.mrf.mxu3 }
 0x133   : > { %v726_v0 = vld [vmem:[%s1787_s4] sm:$0x1] }
 0x134   : > { %1255 = vtanh.f32 %v726_v0 }
 0x13a   : > { %v1256_v1 = vpop.eup %1255 }
 0x13b   : > { %728 = vst [vmem:[%s1787_s4] sm:$0x1] %v1256_v1 }
 0x13c PF: > { %s1959_s5 = sld [smem:[#allocation24_spill]]  ;;  %s740_s23 = sshll.u32 %s1787_s4, 4  ;;  %s741_s23 = int_to_ptr.vmem [resolvable:$true] %s740_s23 }
 0x13d   : > { %s1960_s12 = sld [smem:[#allocation34_spill]]  ;;  %s730_s9 = scalar_lea.sflag [#allocation4], %s1764_s19 }
 0x143   : > { %s738_s21 = scalar_lea.hbm %s1960_s12, %s1959_s5  ;;  %s1361_s11 = scalar_lea.hbm %s1960_s12, 2 }
 0x144   : > { %s742_s25 = sshll.u32 %s738_s21, 4  ;;  %s743_s25 = int_to_ptr.hbm [resolvable:$true] %s742_s25 }
 0x145   : > { %s1355_s24 = sshra.s32 %s743_s25, 4  ;;  %s1356_s24 = int_to_ptr.hbm [resolvable:$true] %s1355_s24 }
 0x146   : > { %s1357_s7 = scalar_lea.hbm %s1356_s24, 1  ;;  %p1362_p9 = scmp.lt.s32.totalorder %s1356_s24, %s1960_s12 }
 0x147   : > { %p1358_p4 = scmp.ne.s32.totalorder %s1356_s24, %s1357_s7  ;;  %p1363_p2 = scmp.lt.s32.totalorder %s1361_s11, %s1357_s7 }
 0x149   : > { %p1359_p5 = pnand %p1358_p4, %p1687_p11  ;;  %p1364_p3 = por %p1363_p2, %p1362_p9 }
 0x14b   : > { %p1360_p6 = pneg %p1359_p5 }
 0x14d   : > { %p1365_p7 = pnand %p1364_p3, %p1360_p6 }
 0x14f   : > { %1368 = shalt.err (!%p1365_p7)
}
 0x150   : > { %1129 = dma.vmem_to_hbm [thread:$0]  (%p1687_p11), %s741_s23, 16, %s743_s25, %s730_s9  }
 0x151 PF: > { %s1962_s19 = sld [smem:[#allocation20_spill]]  ;;  %p1135_p8 = scmp.ge.s32.totalorder %s1499_s28, 2 }
 0x153   : > { %p1132_p10 = pnand %p1135_p8, %p1696_p0 }
 0x155   : > { %p1133_p12 = pneg %p1132_p10 }
 0x157   : > { %s754_s4 = sand.u32 1, %s1962_s19  }
 0x158   : > { %s755_s16 = scalar_lea.sflag [#allocation4], %s754_s4 }
 0x159   : > { %1442 = dma.done.wait (%p1133_p12), %s755_s16, 16  }
 0x15a   : > { %1444 = vsyncadd (%p1133_p12), %s755_s16, 4294967280  ;;  %s26_s28 = sadd.s32 1, %s1499_s28   ;;  %s1965_s15 = sld [smem:[#allocation19_spill]] }
 0x15b   : > { %p1856_p13 = scmp.ge.s32.totalorder %s26_s28, 6   ;;  %s1966_s5 = sld [smem:[#allocation30_spill]] }
 0x15c   : > { %s1967_s14 = sld [smem:[#allocation21_spill]]  ;;  %s1974_s16 = smov %s1455_s17 }
 0x15d   : > { %s1968_s10 = sld [smem:[#allocation28_spill]]  ;;  %s1977_s19 = smov %s1467_s20 }
 0x15e   : > { %s1969_s23 = sld [smem:[#allocation22_spill]]  ;;  %s1979_s21 = smov %s1475_s22 }
 0x15f   : > { %s1970_s25 = sld [smem:[#allocation27_spill]]  ;;  %s1982_s24 = smov %s1491_s26 }
 0x160   : > { %s1971_s9 = sld [smem:[#allocation25_spill]] }
 0x161   : > { %s1972_s7 = sld [smem:[#allocation26_spill]]  ;;  %s1975_s17 = smov %s1966_s5 }
 0x162   : > { %s1976_s18 = smov %s1967_s14 }
 0x163   : > { %s1978_s20 = smov %s1968_s10  ;;  %25 = sbr.rel (!%p1856_p13) target bundleno = 16 (0x10), region = 134 }
 0x164   : > { %s1980_s22 = smov %s1969_s23 }
 0x165   : > { %s1981_s23 = smov %s1970_s25  ;;  %s1983_s25 = smov %s1495_s27 }
 0x166   : > { %s1984_s26 = smov %s1971_s9 }
 0x167   : > { %s1985_s27 = smov %s1972_s7 }
 0x168   :  { %760 = vsyncpa [#allocation3], 1 }
 0x169   :  { %762 = vsyncpa [#allocation3 + $0x1], 1 }
 0x16a   :  { %763 = vsyncpa [#allocation6], 1 }
 0x16b   :  { %765 = vsyncpa [#allocation6 + $0x1], 1 }
 0x16c   :  { %766 = vsyncpa [#allocation9], 1 }
 0x16d   :  { %768 = vsyncpa [#allocation9 + $0x1], 1 }
 0x16e   :  { %769 = vsyncpa [#allocation4], 1 }
 0x16f   :  { %771 = vsyncpa [#allocation4 + $0x1], 1 }

</bundles_post_ra>
